<compile_context>
chip_gen: v6e
topology: v6e:2x2x1
jax: 0.10.0
libtpu: 0.0.40
codegen_flags: <defaults>
</compile_context>

<pallas_src>
import jax
import jax.numpy as jnp
from jax.experimental import pallas as pl
from jax.experimental.pallas import tpu as pltpu


def _round_up(n: int, m: int) -> int:
    return ((n + m - 1) // m) * m


def mlp_kernel(x_ref, w1_ref, b1_ref, w2_ref, b2_ref, o_ref):
    # hidden = x @ W1 + b1   (no nonlinearity in the reference module)
    h = jnp.dot(x_ref[...], w1_ref[...],
                preferred_element_type=jnp.float32) + b1_ref[...]
    # out = hidden @ W2 + b2  (cast h to W2's dtype; no-op on the f32 path,
    # keeps the second matmul in bf16 on the bf16 path, f32 accumulation)
    out = jnp.dot(h.astype(w2_ref.dtype), w2_ref[...],
                  preferred_element_type=jnp.float32) + b2_ref[...]
    o_ref[...] = out.astype(o_ref.dtype)


def linear_fashion_mnist_alt(x, w1, b1, w2, b2, *, use_bf16=False, tb_max=512):
    """x: (B, C, H, W) float32.  w1: (D, 128), b1: (1, 128),
    w2: (128, num_classes), b2: (1, num_classes).  Returns (B, num_classes) f32 logits."""
    B = x.shape[0]
    x_flat = x.reshape(B, -1).astype(jnp.float32)      # flatten (glue, plain JAX)
    D = x_flat.shape[1]
    H = w1.shape[1]
    C = w2.shape[1]

    # --- lane-dense output padding: C -> NPAD (multiple of 128) -----------------
    NPAD = _round_up(C, 128)
    w2_p = jnp.zeros((H, NPAD), jnp.float32).at[:, :C].set(w2.astype(jnp.float32))
    b2_p = jnp.zeros((1, NPAD), jnp.float32).at[:, :C].set(b2.astype(jnp.float32))
    b1_p = b1.astype(jnp.float32).reshape(1, H)

    # --- batch padding + tiling (TB multiple of 8 sublanes) ----------------------
    TB = min(_round_up(B, 8), tb_max)
    B_pad = _round_up(B, TB)
    if B_pad != B:
        x_flat = jnp.zeros((B_pad, D), jnp.float32).at[:B, :].set(x_flat)

    # --- optional bf16 inputs with f32 accumulation ------------------------------
    if use_bf16:
        x_in = x_flat.astype(jnp.bfloat16)
        w1_in = w1.astype(jnp.bfloat16)
        w2_in = w2_p.astype(jnp.bfloat16)
    else:
        x_in = x_flat
        w1_in = w1.astype(jnp.float32)
        w2_in = w2_p

    grid = (B_pad // TB,)

    cost = pl.CostEstimate(
        flops=2 * B_pad * (D * H + H * NPAD),
        transcendentals=0,
        bytes_accessed=(x_in.size * x_in.dtype.itemsize
                        + w1_in.size * w1_in.dtype.itemsize
                        + b1_p.size * 4
                        + w2_in.size * w2_in.dtype.itemsize
                        + b2_p.size * 4
                        + B_pad * NPAD * 4),
    )

    out_padded = pl.pallas_call(
        mlp_kernel,
        out_shape=jax.ShapeDtypeStruct((B_pad, NPAD), jnp.float32),
        grid=grid,
        in_specs=[
            pl.BlockSpec((TB, D), lambda i: (i, 0)),      # x tile, streamed over batch
            pl.BlockSpec((D, H), lambda i: (0, 0)),       # W1: VMEM-resident
            pl.BlockSpec((1, H), lambda i: (0, 0)),       # b1: VMEM-resident
            pl.BlockSpec((H, NPAD), lambda i: (0, 0)),    # W2 (padded): VMEM-resident
            pl.BlockSpec((1, NPAD), lambda i: (0, 0)),    # b2 (padded): VMEM-resident
        ],
        out_specs=pl.BlockSpec((TB, NPAD), lambda i: (i, 0)),
        compiler_params=pltpu.CompilerParams(
            dimension_semantics=("parallel",)),
        cost_estimate=cost,
    )(x_in, w1_in, b1_p, w2_in, b2_p)

    # Slice padded rows / lanes back to the logical logits.
    return out_padded[:B, :C]


if __name__ == "__main__":
    # Small shapes consistent with the module: a 16x16 single-channel "image".
    B, Cin, Himg, Wimg = 2, 1, 16, 16
    input_size = Cin * Himg * Wimg       # 256
    hidden = 128
    num_classes = 10

    key = jax.random.PRNGKey(0)
    kx, kw1, kb1, kw2, kb2 = jax.random.split(key, 5)

    x = jax.random.normal(kx, (B, Cin, Himg, Wimg), dtype=jnp.float32)

    # Deterministic parameter init (uniform, roughly like torch's default scale).
    bound1 = 1.0 / (input_size ** 0.5)
    w1 = jax.random.uniform(kw1, (input_size, hidden), jnp.float32, -bound1, bound1)
    b1 = jax.random.uniform(kb1, (1, hidden), jnp.float32, -bound1, bound1)
    bound2 = 1.0 / (hidden ** 0.5)
    w2 = jax.random.uniform(kw2, (hidden, num_classes), jnp.float32, -bound2, bound2)
    b2 = jax.random.uniform(kb2, (1, num_classes), jnp.float32, -bound2, bound2)

    # Pure-JAX reference.
    ref = (x.reshape(B, -1) @ w1 + b1) @ w2 + b2

    # f32 path: strict check (exact forward semantics of the module).
    out = linear_fashion_mnist_alt(x, w1, b1, w2, b2, use_bf16=False)
    out = jax.block_until_ready(out)
    assert out.shape == (B, num_classes)
    assert jnp.allclose(out, ref, atol=1e-4, rtol=1e-4), "f32 mismatch vs reference"

    # bf16-input path (f32 accumulation): loose check, exercises the fast path.
    out_bf16 = linear_fashion_mnist_alt(x, w1, b1, w2, b2, use_bf16=True)
    out_bf16 = jax.block_until_ready(out_bf16)
    assert out_bf16.shape == (B, num_classes)
    assert jnp.allclose(out_bf16, ref, atol=5e-2, rtol=5e-2), "bf16 mismatch vs reference"

    print("KERNEL_OK")
</pallas_src>

<mosaic_0001>
module attributes {stable_mosaic.version = 11 : i64} {
  func.func @mlp_kernel(%arg0: i32, %arg1: memref<8x256xf32, #tpu.memory_space<vmem>>, %arg2: memref<256x128xf32, #tpu.memory_space<vmem>>, %arg3: memref<1x128xf32, #tpu.memory_space<vmem>>, %arg4: memref<128x128xf32, #tpu.memory_space<vmem>>, %arg5: memref<1x128xf32, #tpu.memory_space<vmem>>, %arg6: memref<8x128xf32, #tpu.memory_space<vmem>>) attributes {dimension_semantics = [#tpu.dimension_semantics<parallel>], iteration_bounds = array<i64: 1>, scalar_prefetch = 0 : i64, scratch_operands = 0 : i64, tpu.core_type = #tpu.core_type<tc>, window_params = [{transform_indices = @transform_0, window_bounds = array<i64: 8, 256>}, {pipeline_mode = #tpu.pipeline_mode<synchronous>, transform_indices = @transform_1, window_bounds = array<i64: 256, 128>}, {pipeline_mode = #tpu.pipeline_mode<synchronous>, transform_indices = @transform_2, window_bounds = array<i64: 1, 128>}, {pipeline_mode = #tpu.pipeline_mode<synchronous>, transform_indices = @transform_3, window_bounds = array<i64: 128, 128>}, {pipeline_mode = #tpu.pipeline_mode<synchronous>, transform_indices = @transform_4, window_bounds = array<i64: 1, 128>}, {transform_indices = @transform_5, window_bounds = array<i64: 8, 128>}]} {
    %c0 = arith.constant 0 : index
    %c0_0 = arith.constant 0 : index
    %0 = vector.load %arg1[%c0, %c0_0] : memref<8x256xf32, #tpu.memory_space<vmem>>, vector<8x256xf32>
    %c0_1 = arith.constant 0 : index
    %c0_2 = arith.constant 0 : index
    %1 = vector.load %arg2[%c0_1, %c0_2] : memref<256x128xf32, #tpu.memory_space<vmem>>, vector<256x128xf32>
    %cst = arith.constant dense<0.000000e+00> : vector<8x128xf32>
    %2 = tpu.matmul %0, %1, %cst {dimension_numbers = #tpu.dot_dimension_numbers<[1], [0], [0], [1], [0, 0, 1, 1], [], []>} : vector<8x256xf32>, vector<256x128xf32>, vector<8x128xf32> -> vector<8x128xf32>
    %c0_3 = arith.constant 0 : index
    %c0_4 = arith.constant 0 : index
    %3 = vector.load %arg3[%c0_3, %c0_4] : memref<1x128xf32, #tpu.memory_space<vmem>>, vector<1x128xf32>
    %4 = vector.broadcast %3 : vector<1x128xf32> to vector<8x128xf32>
    %5 = arith.addf %2, %4 : vector<8x128xf32>
    %c0_5 = arith.constant 0 : index
    %c0_6 = arith.constant 0 : index
    %6 = vector.load %arg4[%c0_5, %c0_6] : memref<128x128xf32, #tpu.memory_space<vmem>>, vector<128x128xf32>
    %cst_7 = arith.constant dense<0.000000e+00> : vector<8x128xf32>
    %7 = tpu.matmul %5, %6, %cst_7 {dimension_numbers = #tpu.dot_dimension_numbers<[1], [0], [0], [1], [0, 0, 1, 1], [], []>} : vector<8x128xf32>, vector<128x128xf32>, vector<8x128xf32> -> vector<8x128xf32>
    %c0_8 = arith.constant 0 : index
    %c0_9 = arith.constant 0 : index
    %8 = vector.load %arg5[%c0_8, %c0_9] : memref<1x128xf32, #tpu.memory_space<vmem>>, vector<1x128xf32>
    %9 = vector.broadcast %8 : vector<1x128xf32> to vector<8x128xf32>
    %10 = arith.addf %7, %9 : vector<8x128xf32>
    %c0_10 = arith.constant 0 : index
    %c0_11 = arith.constant 0 : index
    %11 = vector.load %arg6[%c0_10, %c0_11] : memref<8x128xf32, #tpu.memory_space<vmem>>, vector<8x128xf32>
    tpu.vector_store %arg6[%c0_10, %c0_11], %10 {strides = array<i32>} : memref<8x128xf32, #tpu.memory_space<vmem>>, vector<8x128xf32>,
    return
  }
  func.func @transform_0(%arg0: i32) -> (i32, i32) {
    %c0_i32 = arith.constant 0 : i32
    %c0_i32_0 = arith.constant 0 : i32
    return %arg0, %c0_i32 : i32, i32
  }
  func.func @transform_1(%arg0: i32) -> (i32, i32) {
    %c0_i32 = arith.constant 0 : i32
    %c0_i32_0 = arith.constant 0 : i32
    %c0_i32_1 = arith.constant 0 : i32
    return %c0_i32, %c0_i32_0 : i32, i32
  }
  func.func @transform_2(%arg0: i32) -> (i32, i32) {
    %c0_i32 = arith.constant 0 : i32
    %c0_i32_0 = arith.constant 0 : i32
    %c0_i32_1 = arith.constant 0 : i32
    return %c0_i32, %c0_i32_0 : i32, i32
  }
  func.func @transform_3(%arg0: i32) -> (i32, i32) {
    %c0_i32 = arith.constant 0 : i32
    %c0_i32_0 = arith.constant 0 : i32
    %c0_i32_1 = arith.constant 0 : i32
    return %c0_i32, %c0_i32_0 : i32, i32
  }
  func.func @transform_4(%arg0: i32) -> (i32, i32) {
    %c0_i32 = arith.constant 0 : i32
    %c0_i32_0 = arith.constant 0 : i32
    %c0_i32_1 = arith.constant 0 : i32
    return %c0_i32, %c0_i32_0 : i32, i32
  }
  func.func @transform_5(%arg0: i32) -> (i32, i32) {
    %c0_i32 = arith.constant 0 : i32
    %c0_i32_0 = arith.constant 0 : i32
    return %arg0, %c0_i32 : i32, i32
  }
}

</mosaic_0001>

<bundles_post_ra>
// kernel: tpu_custom_call.1
= control target key start
LH: loop header
LB: loop body
LE: loop exit
PB: predicated region body
PF: predicated region fallthrough
CT: control target
= control target key end

     0   :  { %10 = vsyncpa [#allocation3], 0  ;;  %s537_s0 = inlined_call_operand.hbm [shape: f32[8,256], index: 0, kind: input, shape index: {}]   ;;  %s538_s1 = inlined_call_operand.hbm [shape: f32[256,128], index: 1, kind: input, shape index: {}]   ;;  %s539_s2 = inlined_call_operand.vmem [shape: f32[1,128], index: 2, kind: input, shape index: {}]   ;;  %s540_s3 = inlined_call_operand.hbm [shape: f32[128,128], index: 3, kind: input, shape index: {}]   ;;  %s541_s4 = inlined_call_operand.vmem [shape: f32[1,128], index: 4, kind: input, shape index: {}]   ;;  %s542_s5 = inlined_call_operand.hbm [shape: f32[8,128], index: 5, kind: output, shape index: {}]  }
   0x1   :  { %11 = vsyncpa [#allocation6], 0 }
   0x2   :  { %12 = vsyncpa [#allocation4], 0  ;;  %s464_s18 = smov [#allocation5]  }
   0x3   :  { %s28_s19 = sshll.u32 %s464_s18, 4  ;;  %s29_s19 = int_to_ptr.vmem [resolvable:$true] %s28_s19 }
   0x4   :  { %s386_s20 = scalar_lea.vmem %s29_s19, 4096  ;;  %p391_p1 = scmp.lt.s32.totalorder %s29_s19, %s29_s19 }
   0x5   :  { %p387_p0 = scmp.ne.s32.totalorder %s29_s19, %s386_s20  ;;  %p392_p2 = scmp.lt.s32.totalorder %s386_s20, %s386_s20 }
   0x7   :  { %p393_p3 = por %p392_p2, %p391_p1 }
   0x9   :  { %p394_p4 = pnand %p393_p3, %p387_p0 }
   0xb   :  { %397 = shalt.err (!%p394_p4)
}
   0xc   :  { %s465_s21 = smov 128   ;;  %s466_s22 = smov 8  }
   0xd   :  { %34 = dma.hbm_to_vmem [thread:$0]  %s538_s1, 4096, %s29_s19, [#allocation6], %s465_s21, %s465_s21, %s466_s22  }
   0xe   :  { %s467_s25 = smov [#allocation2]   ;;  %s468_s27 = smov [#allocation7]  }
   0xf   :  { %s19_s26 = sshll.u32 %s467_s25, 4  ;;  %s42_s28 = sshll.u32 %s468_s27, 4  ;;  %s20_s26 = int_to_ptr.vmem [resolvable:$true] %s19_s26  ;;  %s43_s28 = int_to_ptr.vmem [resolvable:$true] %s42_s28 }
  0x10   :  { %s406_s29 = scalar_lea.vmem %s20_s26, 256  ;;  %p411_p6 = scmp.lt.s32.totalorder %s20_s26, %s20_s26 }
  0x11   :  { %p407_p5 = scmp.ne.s32.totalorder %s20_s26, %s406_s29  ;;  %p412_p7 = scmp.lt.s32.totalorder %s406_s29, %s406_s29 }
  0x13   :  { %p413_p8 = por %p412_p7, %p411_p6 }
  0x15   :  { %p414_p9 = pnand %p413_p8, %p407_p5 }
  0x17   :  { %417 = shalt.err (!%p414_p9)
}
  0x18   :  { %22 = dma.hbm_to_vmem [thread:$0]  %s537_s0, 256, %s20_s26, [#allocation3]  }
  0x19   :  { %s426_s7 = scalar_lea.vmem %s43_s28, 2048  ;;  %p431_p11 = scmp.lt.s32.totalorder %s43_s28, %s43_s28 }
  0x1a   :  { %p427_p10 = scmp.ne.s32.totalorder %s43_s28, %s426_s7  ;;  %p432_p12 = scmp.lt.s32.totalorder %s426_s7, %s426_s7 }
  0x1c   :  { %p433_p13 = por %p432_p12, %p431_p11 }
  0x1e   :  { %p434_p0 = pnand %p433_p13, %p427_p10 }
  0x20   :  { %437 = shalt.err (!%p434_p0)
}
  0x21   :  { %48 = dma.hbm_to_vmem [thread:$0]  %s540_s3, 2048, %s43_s28, [#allocation6], %s465_s21, %s465_s21, %s466_s22  }
  0x22   :  { %458 = dma.done.wait [#allocation3], 256  }
  0x23   :  { %459 = vsyncadd [#allocation3], 4294967040 }
  0x24   :  { %460 = dma.done.wait [#allocation6], 6144  }
  0x25   :  { %461 = vsyncadd [#allocation6], 4294961152  ;;  %v469_v0 = vmov 0.0   ;;  %v93_v1 = vld [vmem:[#allocation5 + $0xf8] sm:$0xff]  ;;  %v92_v3 = vld [vmem:[#allocation5 + $0xf0] sm:$0xff]  ;;  %vm470_vm0 = vmmov 0  }
  0x26   :  { %335 = vmatprep.subr.mxu1 %v469_v0  ;;  %v77_v2 = vld [vmem:[#allocation5 + $0x78] sm:$0xff]  ;;  %283 = vmatprep.subr.mxu0 %v93_v1  ;;  %v76_v4 = vld [vmem:[#allocation5 + $0x70] sm:$0xff]  ;;  %v91_v5 = vld [vmem:[#allocation5 + $0xe8] sm:$0xff]  ;;  %s471_s11 = smov [#allocation8]  }
  0x27   :  { %284 = vmatpush3.msra.mxu0 %v77_v2  ;;  %v75_v6 = vld [vmem:[#allocation5 + $0x68] sm:$0xff]  ;;  %v90_v7 = vld [vmem:[#allocation5 + $0xe0] sm:$0xff]  ;;  %v89_v9 = vld [vmem:[#allocation5 + $0xd8] sm:$0xff]  ;;  %367 = vmatprep.mubr.msk.f32.mxu1 %vm470_vm0, %v469_v0  ;;  %s271_s12 = sshll.u32 %s471_s11, 4  ;;  %s272_s12 = int_to_ptr.vmem [resolvable:$true] %s271_s12 }
  0x28   :  { %285 = vmatprep.subr.mxu0 %v92_v3  ;;  %v74_v8 = vld [vmem:[#allocation5 + $0x60] sm:$0xff]  ;;  %v73_v10 = vld [vmem:[#allocation5 + $0x58] sm:$0xff]  ;;  %v88_v11 = vld [vmem:[#allocation5 + $0xd0] sm:$0xff]  ;;  %s438_s13 = scalar_lea.vmem %s272_s12, 128  ;;  %p443_p2 = scmp.lt.s32.totalorder %s272_s12, %s272_s12 }
  0x29   :  { %286 = vmatpush3.msra.mxu0 %v76_v4  ;;  %v72_v12 = vld [vmem:[#allocation5 + $0x50] sm:$0xff]  ;;  %v87_v13 = vld [vmem:[#allocation5 + $0xc8] sm:$0xff]  ;;  %v61_v14 = vld [vmem:[#allocation2 + $0x8] sm:$0xff]  ;;  %p439_p1 = scmp.ne.s32.totalorder %s272_s12, %s438_s13  ;;  %p444_p3 = scmp.lt.s32.totalorder %s438_s13, %s438_s13 }
  0x2a   :  { %287 = vmatprep.subr.mxu0 %v91_v5  ;;  %v71_v15 = vld [vmem:[#allocation5 + $0x48] sm:$0xff]  ;;  %165 = vmatprep.mubr.f32.mxu0 %v61_v14  ;;  %v186_v16 = vld [vmem:[#allocation7 + $0x78] sm:$0xff]  ;;  %v185_v17 = vld [vmem:[#allocation7 + $0x70] sm:$0xff] }
  0x2b   :  { %288 = vmatpush3.msra.mxu0 %v75_v6  ;;  %v86_v18 = vld [vmem:[#allocation5 + $0xc0] sm:$0xff]  ;;  %336 = vmatpush3.msra.mxu1 %v186_v16  ;;  %v184_v20 = vld [vmem:[#allocation7 + $0x68] sm:$0xff]  ;;  %v85_v21 = vld [vmem:[#allocation5 + $0xb8] sm:$0xff]  ;;  %p445_p4 = por %p444_p3, %p443_p2 }
  0x2c   :  { %289 = vmatprep.subr.mxu0 %v90_v7  ;;  %v70_v19 = vld [vmem:[#allocation5 + $0x40] sm:$0xff]  ;;  %337 = vmatprep.subr.mxu1 %v469_v0  ;;  %v69_v22 = vld [vmem:[#allocation5 + $0x38] sm:$0xff]  ;;  %v84_v24 = vld [vmem:[#allocation5 + $0xb0] sm:$0xff] }
  0x2d   :  { %290 = vmatpush3.msra.mxu0 %v74_v8  ;;  %338 = vmatpush3.msra.mxu1 %v185_v17  ;;  %v183_v23 = vld [vmem:[#allocation7 + $0x60] sm:$0xff]  ;;  %v68_v25 = vld [vmem:[#allocation5 + $0x30] sm:$0xff]  ;;  %v182_v26 = vld [vmem:[#allocation7 + $0x58] sm:$0xff]  ;;  %p446_p5 = pnand %p445_p4, %p439_p1 }
  0x2e   :  { %291 = vmatprep.subr.mxu0 %v89_v9  ;;  %339 = vmatprep.subr.mxu1 %v469_v0  ;;  %v83_v27 = vld [vmem:[#allocation5 + $0xa8] sm:$0xff]  ;;  %v181_v29 = vld [vmem:[#allocation7 + $0x50] sm:$0xff]  ;;  %v82_v30 = vld [vmem:[#allocation5 + $0xa0] sm:$0xff] }
  0x2f   :  { %292 = vmatpush3.msra.mxu0 %v73_v10  ;;  %340 = vmatpush3.msra.mxu1 %v184_v20  ;;  %v67_v28 = vld [vmem:[#allocation5 + $0x28] sm:$0xff]  ;;  %v66_v31 = vld [vmem:[#allocation5 + $0x20] sm:$0xff]  ;;  %v81_v33 = vld [vmem:[#allocation5 + $0x98] sm:$0xff] }
  0x30   :  { %293 = vmatprep.subr.mxu0 %v88_v11  ;;  %341 = vmatprep.subr.mxu1 %v469_v0  ;;  %v180_v32 = vld [vmem:[#allocation7 + $0x48] sm:$0xff]  ;;  %v65_v34 = vld [vmem:[#allocation5 + $0x18] sm:$0xff]  ;;  %v179_v35 = vld [vmem:[#allocation7 + $0x40] sm:$0xff] }
  0x31   :  { %294 = vmatpush3.msra.mxu0 %v72_v12  ;;  %342 = vmatpush3.msra.mxu1 %v183_v23  ;;  %v80_v36 = vld [vmem:[#allocation5 + $0x90] sm:$0xff]  ;;  %v178_v38 = vld [vmem:[#allocation7 + $0x38] sm:$0xff]  ;;  %v79_v39 = vld [vmem:[#allocation5 + $0x88] sm:$0xff] }
  0x32   :  { %295 = vmatprep.subr.mxu0 %v87_v13  ;;  %343 = vmatprep.subr.mxu1 %v469_v0  ;;  %v64_v37 = vld [vmem:[#allocation5 + $0x10] sm:$0xff]  ;;  %v63_v40 = vld [vmem:[#allocation5 + $0x8] sm:$0xff]  ;;  %v78_v42 = vld [vmem:[#allocation5 + $0x80] sm:$0xff] }
  0x33   :  { %296 = vmatpush3.msra.mxu0 %v71_v15  ;;  %344 = vmatpush3.msra.mxu1 %v182_v26  ;;  %v177_v41 = vld [vmem:[#allocation7 + $0x30] sm:$0xff]  ;;  %v62_v43 = vld [vmem:[#allocation5] sm:$0xff]  ;;  %v176_v44 = vld [vmem:[#allocation7 + $0x28] sm:$0xff] }
  0x34   :  { %297 = vmatprep.subr.mxu0 %v86_v18  ;;  %345 = vmatprep.subr.mxu1 %v469_v0  ;;  %v60_v45 = vld [vmem:[#allocation2] sm:$0xff]  ;;  %v175_v46 = vld [vmem:[#allocation7 + $0x20] sm:$0xff]  ;;  %v174_v47 = vld [vmem:[#allocation7 + $0x18] sm:$0xff] }
  0x35   :  { %298 = vmatpush3.msra.mxu0 %v70_v19  ;;  %346 = vmatpush3.msra.mxu1 %v181_v29  ;;  %v173_v48 = vld [vmem:[#allocation7 + $0x10] sm:$0xff]  ;;  %v172_v49 = vld [vmem:[#allocation7 + $0x8] sm:$0xff]  ;;  %v171_v50 = vld [vmem:[#allocation7] sm:$0xff] }
  0x36   :  { %299 = vmatprep.subr.mxu0 %v85_v21  ;;  %347 = vmatprep.subr.mxu1 %v469_v0  ;;  %v281_v52 = vld [vmem:[%s539_s2] ss:$0 sm:$0xff] }
  0x37   :  { %300 = vmatpush3.msra.mxu0 %v69_v22  ;;  %348 = vmatpush3.msra.mxu1 %v180_v32  ;;  %v282_v56 = vld [vmem:[%s541_s4] ss:$0 sm:$0xff] }
  0x38   :  { %301 = vmatprep.subr.mxu0 %v84_v24  ;;  %349 = vmatprep.subr.mxu1 %v469_v0 }
  0x39   :  { %302 = vmatpush3.msra.mxu0 %v68_v25  ;;  %350 = vmatpush3.msra.mxu1 %v179_v35 }
  0x3a   :  { %303 = vmatprep.subr.mxu0 %v83_v27  ;;  %351 = vmatprep.subr.mxu1 %v469_v0 }
  0x3b   :  { %304 = vmatpush3.msra.mxu0 %v67_v28  ;;  %352 = vmatpush3.msra.mxu1 %v178_v38 }
  0x3c   :  { %305 = vmatprep.subr.mxu0 %v82_v30  ;;  %353 = vmatprep.subr.mxu1 %v469_v0 }
  0x3d   :  { %306 = vmatpush3.msra.mxu0 %v66_v31  ;;  %354 = vmatpush3.msra.mxu1 %v177_v41 }
  0x3e   :  { %307 = vmatprep.subr.mxu0 %v81_v33  ;;  %355 = vmatprep.subr.mxu1 %v469_v0 }
  0x3f   :  { %308 = vmatpush3.msra.mxu0 %v65_v34  ;;  %356 = vmatpush3.msra.mxu1 %v176_v44 }
  0x40   :  { %309 = vmatprep.subr.mxu0 %v80_v36  ;;  %357 = vmatprep.subr.mxu1 %v469_v0 }
  0x41   :  { %310 = vmatpush3.msra.mxu0 %v64_v37  ;;  %358 = vmatpush3.msra.mxu1 %v175_v46 }
  0x42   :  { %311 = vmatprep.subr.mxu0 %v79_v39  ;;  %359 = vmatprep.subr.mxu1 %v469_v0 }
  0x43   :  { %312 = vmatpush3.msra.mxu0 %v63_v40  ;;  %360 = vmatpush3.msra.mxu1 %v174_v47 }
  0x44   :  { %313 = vmatprep.subr.mxu0 %v78_v42  ;;  %361 = vmatprep.subr.mxu1 %v469_v0 }
  0x45   :  { %314 = vmatpush3.msra.mxu0 %v62_v43  ;;  %362 = vmatpush3.msra.mxu1 %v173_v48 }
  0x46   :  { %166 = vmatmul.mubr.f32.vlgmr.msra.gmra.mxu0 %v60_v45  ;;  %363 = vmatprep.subr.mxu1 %v469_v0 }
  0x47   :  { %364 = vmatpush3.msra.mxu1 %v172_v49 }
  0x48   :  { %365 = vmatprep.subr.mxu1 %v469_v0 }
  0x49   :  { %366 = vmatpush3.msra.mxu1 %v171_v50 }
 0x106   :  { %v315_v51 = vpop.f32.mrf.mxu0 }
 0x108   :  { %v316_v53 = vpop.f32.mrf.mxu0 }
 0x109   :  { %v317_v54 = vadd.f32 %v316_v53, %v315_v51 }
 0x10b   :  { %v168_v55 = vadd.f32 %v317_v54, %v281_v52 }
 0x10d   :  { %368 = vmatmul.mubr.f32.vlgmr.msra.gmra.mxu1 %v168_v55 }
 0x1cd   :  { %v260_v57 = vpop.f32.mrf.mxu1 }
 0x1ce   :  { %v261_v58 = vadd.f32 %v282_v56, %v260_v57 }
 0x1cf   :  { %v369_v59 = vpop.f32.mrf.mxu1 }
 0x1d0   :  { %264 = vst [vmem:[#allocation8] sm:$0xff] %v261_v58 }
 0x1d1   :  { %449 = shalt.err (!%p446_p5)
}
 0x1d2   :  { %274 = dma.vmem_to_hbm [thread:$0]  %s272_s12, 128, %s542_s5, [#allocation4]  }
 0x1d3   :  { %462 = dma.done.wait [#allocation4], 128  }
 0x1d4   :  { %463 = vsyncadd [#allocation4], 4294967168 }
 0x1d5   :  { %278 = vsyncpa [#allocation3], 1 }
 0x1d6   :  { %279 = vsyncpa [#allocation6], 1 }
 0x1d7   :  { %280 = vsyncpa [#allocation4], 1 }

</bundles_post_ra>
